<compile_context>
chip_gen: v7x
topology: tpu7x:2x2x1
jax: 0.10.0
libtpu: 0.0.40
codegen_flags: <defaults>
</compile_context>

<pallas_src>
import functools

import jax
import jax.numpy as jnp
from jax.experimental import pallas as pl
from jax.experimental.pallas import tpu as pltpu


def _round_up(v, m):
    return ((v + m - 1) // m) * m


def _vmem_budget_bytes():
    """Generation-aware usable VMEM budget (leave ~25% for Mosaic internals)."""
    cap = None
    try:
        info = pltpu.get_tpu_info()
        cap = getattr(info, "vmem_capacity_bytes", None)
    except Exception:
        cap = None
    if not isinstance(cap, int) or cap <= 0:
        cap = 64 * 1024 * 1024  # conservative default (v7x-sized)
    return int(cap * 3 // 4)    # 64 MiB -> 48 MiB (v7x); 128 MiB -> 96 MiB (v5e/v6e)


_VMEM_BUDGET = _vmem_budget_bytes()


# ----------------------------------------------------------------------------
# Kernel: one row-tile of nodes, one dim_hid-tile (K) per grid step.
#   grid = (num_row_tiles, num_k_tiles); reduction axis (k) last.
# ----------------------------------------------------------------------------
def mlp_kernel(x_ref, w1_ref, b1_ref, w2_ref, b2_ref, o_ref, acc_ref):
    k = pl.program_id(1)

    @pl.when(k == 0)
    def _init():
        acc_ref[...] = jnp.zeros_like(acc_ref)

    xv = x_ref[...]
    if xv.dtype != w1_ref.dtype:
        xv = xv.astype(w1_ref.dtype)          # enables bf16 MXU path if params are bf16

    # fc1 chunk: [TM, dim_in] @ [dim_in, TK] + [1, TK], then ReLU (f32 accumulation).
    h = jnp.dot(xv, w1_ref[...], preferred_element_type=jnp.float32)
    h = jnp.maximum(h + b1_ref[...].astype(jnp.float32), 0.0)
    if w2_ref.dtype != jnp.float32:
        h = h.astype(w2_ref.dtype)

    # fc2 partial sum over this dim_hid chunk: [TM, TK] @ [TK, NC_PAD].
    acc_ref[...] += jnp.dot(h, w2_ref[...], preferred_element_type=jnp.float32)

    @pl.when(k == pl.num_programs(1) - 1)
    def _finish():
        o_ref[...] = (acc_ref[...] + b2_ref[...].astype(jnp.float32)).astype(o_ref.dtype)


# ----------------------------------------------------------------------------
# One-time parameter preparation (do NOT call this per forward pass).
# ----------------------------------------------------------------------------
def prepare_params(w1, b1, w2, b2, param_dtype=None):
    """Pads dim_hid and num_class up to multiples of 128 (lane-dense layout).

    Zero-padding is exact: padded hidden units get weight 0 / bias 0, so
    relu(0) = 0 and they contribute nothing to fc2. Returns padded params and
    the true num_class (for slicing the output).
    """
    dim_in, dim_hid = w1.shape
    num_class = w2.shape[1]
    dh_pad = _round_up(max(dim_hid, 1), 128)
    nc_pad = _round_up(max(num_class, 1), 128)

    if param_dtype is not None:
        w1, b1, w2, b2 = (t.astype(param_dtype) for t in (w1, b1, w2, b2))

    b1 = jnp.reshape(b1, (1, -1))
    b2 = jnp.reshape(b2, (1, -1))
    w1 = jnp.pad(w1, ((0, 0), (0, dh_pad - dim_hid)))
    b1 = jnp.pad(b1, ((0, 0), (0, dh_pad - dim_hid)))
    w2 = jnp.pad(w2, ((0, dh_pad - dim_hid), (0, nc_pad - num_class)))
    b2 = jnp.pad(b2, ((0, 0), (0, nc_pad - num_class)))
    return (w1, b1, w2, b2), num_class


# ----------------------------------------------------------------------------
# Forward pass.
# ----------------------------------------------------------------------------
@functools.partial(jax.jit, static_argnames=("num_class", "block_rows"))
def node_classification_forward(x, w1, b1, w2, b2, *, num_class, block_rows=2048):
    """x: [N, dim_in]; padded params from prepare_params() -> [N, num_class]."""
    N, dim_in = x.shape
    dh_pad = w1.shape[1]
    nc_pad = w2.shape[1]
    assert w1.shape[0] == dim_in and w2.shape[0] == dh_pad
    assert dh_pad % 128 == 0 and nc_pad % 128 == 0, "run prepare_params() first"

    x_item = jnp.dtype(x.dtype).itemsize
    w_item = jnp.dtype(w1.dtype).itemsize
    o_item = x_item
    # Sublane packing: 8 rows for 4-byte, 16 for 2-byte, 32 for 1-byte dtypes.
    sub = 8 * max(1, 4 // x_item)
    budget = _VMEM_BUDGET

    def est_bytes(tm, tk, nk):
        # Count what the pipeline actually allocates.
        nb_k = 1 if nk == 1 else 2                       # weight buffering depth
        b = 2 * tm * dim_in * x_item                     # x tile (double-buffered)
        b += 2 * tm * nc_pad * o_item                    # out tile (double-buffered)
        b += nb_k * (dim_in * tk + 8 * tk) * w_item      # w1 + b1 (sublane-padded)
        b += nb_k * tk * nc_pad * w_item                 # w2
        b += 8 * nc_pad * w_item                         # b2 (single-buffered)
        b += tm * nc_pad * 4                             # f32 accumulator scratch
        b += 2 * tm * tk * 4                             # f32 hidden intermediate headroom
        return b

    # --- row tile: large, sublane/MXU aligned, >= 2 tiles when splittable ---
    row_align = 256 if N >= 512 else sub
    row_align = _round_up(row_align, sub)
    tm = _round_up(min(max(N, 1), block_rows), row_align)
    if pl.cdiv(N, tm) < 2 and N > sub:
        tm = _round_up(pl.cdiv(N, 2), row_align)         # use both TCs on v7x

    # --- dim_hid tile: prefer fully-resident weights (tk == dh_pad) ---------
    q = dh_pad // 128
    tk_cands = sorted((128 * d for d in range(1, q + 1) if q % d == 0), reverse=True)
    tm_floor = min(tm, _round_up(min(max(N, 1), 256), sub))

    chosen = None
    for tk in tk_cands:
        nk = dh_pad // tk
        t = tm
        while True:
            if est_bytes(t, tk, nk) <= budget:
                chosen = (t, tk, nk)
                break
            if t <= tm_floor:
                break
            nt = max(tm_floor, _round_up(max(t // 2, sub), sub))
            if nt >= t:
                break
            t = nt
        if chosen is not None:
            break
    if chosen is None:
        # TODO(synk): add a dim_in (fc1 reduction) tiling axis for extreme dim_in.
        chosen = (tm_floor, 128, dh_pad // 128)
    tm, tk, nk = chosen

    ni = pl.cdiv(N, tm)
    est = est_bytes(tm, tk, nk)
    vmem_limit = max(16 << 20, min(budget, int(est * 3 // 2) + (4 << 20)))

    # --- BlockSpecs ----------------------------------------------------------
    def param_spec(shape, idx_map, constant):
        if constant:
            return pl.BlockSpec(shape, idx_map, pipeline_mode=pl.Buffered(1))
        return pl.BlockSpec(shape, idx_map)

    in_specs = [
        pl.BlockSpec((tm, dim_in), lambda i, k: (i, 0)),                  # x: row tile
        param_spec((dim_in, tk), lambda i, k: (0, k), constant=(nk == 1)),  # w1
        param_spec((1, tk), lambda i, k: (0, k), constant=(nk == 1)),       # b1
        param_spec((tk, nc_pad), lambda i, k: (k, 0), constant=(nk == 1)),  # w2
        param_spec((1, nc_pad), lambda i, k: (0, 0), constant=True),        # b2
    ]
    out_spec = pl.BlockSpec((tm, nc_pad), lambda i, k: (i, 0))

    out_padded = pl.pallas_call(
        mlp_kernel,
        out_shape=jax.ShapeDtypeStruct((N, nc_pad), x.dtype),
        grid=(ni, nk),
        in_specs=in_specs,
        out_specs=out_spec,
        scratch_shapes=[pltpu.VMEM((tm, nc_pad), jnp.float32)],
        compiler_params=pltpu.CompilerParams(
            dimension_semantics=("parallel", "arbitrary"),
            vmem_limit_bytes=int(vmem_limit),
        ),
    )(x, w1, b1, w2, b2)

    if nc_pad != num_class:
        return out_padded[:, :num_class]
    return out_padded


# ----------------------------------------------------------------------------
# Parameter init mimicking torch.nn.Linear defaults (U(-1/sqrt(fan_in), ...)).
# ----------------------------------------------------------------------------
def init_params(key, dim_in, dim_hid, num_class, dtype=jnp.float32):
    k1, k2, k3, k4 = jax.random.split(key, 4)
    bound1 = 1.0 / (dim_in ** 0.5)
    bound2 = 1.0 / (dim_hid ** 0.5)
    # Stored already transposed: [in, out]
    w1 = jax.random.uniform(k1, (dim_in, dim_hid), dtype, -bound1, bound1)
    b1 = jax.random.uniform(k2, (1, dim_hid), dtype, -bound1, bound1)
    w2 = jax.random.uniform(k3, (dim_hid, num_class), dtype, -bound2, bound2)
    b2 = jax.random.uniform(k4, (1, num_class), dtype, -bound2, bound2)
    return w1, b1, w2, b2


if __name__ == "__main__":
    # Small shapes consistent with the module: N nodes, dim_in, dim_hid, num_class.
    N, dim_in, dim_hid, num_class = 8, 32, 64, 16

    key = jax.random.PRNGKey(0)
    kx, kp = jax.random.split(key)
    x = jax.random.normal(kx, (N, dim_in), dtype=jnp.float32)
    w1, b1, w2, b2 = init_params(kp, dim_in, dim_hid, num_class)

    # One-time padding / layout prep (outside the jitted forward).
    (w1p, b1p, w2p, b2p), nc = prepare_params(w1, b1, w2, b2)

    out = node_classification_forward(x, w1p, b1p, w2p, b2p, num_class=nc)
    out = jax.block_until_ready(out)

    # Reference check in plain JAX (same math as the PyTorch forward).
    ref = jnp.maximum(x @ w1 + b1, 0.0) @ w2 + b2
    assert out.shape == (N, num_class)
    assert jnp.allclose(out, ref, atol=1e-5, rtol=1e-5)

    # Larger N: exercises >=2 row tiles (both TCs on v7x) and a partial last tile.
    N_big = 1500
    x_big = jax.random.normal(jax.random.PRNGKey(1), (N_big, dim_in), jnp.float32)
    out_big = jax.block_until_ready(
        node_classification_forward(x_big, w1p, b1p, w2p, b2p, num_class=nc))
    ref_big = jnp.maximum(x_big @ w1 + b1, 0.0) @ w2 + b2
    assert out_big.shape == (N_big, num_class)
    assert jnp.allclose(out_big, ref_big, atol=1e-4, rtol=1e-4)

    print("KERNEL_OK")
</pallas_src>

<mosaic_0001>
module attributes {stable_mosaic.version = 11 : i64} {
  func.func @mlp_kernel(%arg0: i32, %arg1: i32, %arg2: memref<8x32xf32, #tpu.memory_space<vmem>>, %arg3: memref<32x128xf32, #tpu.memory_space<vmem>>, %arg4: memref<1x128xf32, #tpu.memory_space<vmem>>, %arg5: memref<128x128xf32, #tpu.memory_space<vmem>>, %arg6: memref<1x128xf32, #tpu.memory_space<vmem>>, %arg7: memref<8x128xf32, #tpu.memory_space<vmem>>, %arg8: memref<8x128xf32, #tpu.memory_space<vmem>>) attributes {dimension_semantics = [#tpu.dimension_semantics<parallel>, #tpu.dimension_semantics<arbitrary>], iteration_bounds = array<i64: 1, 1>, scalar_prefetch = 0 : i64, scratch_operands = 1 : i64, tpu.core_type = #tpu.core_type<tc>, window_params = [{transform_indices = @transform_0, window_bounds = array<i64: 8, 32>}, {pipeline_mode = #tpu.pipeline_mode<synchronous>, transform_indices = @transform_1, window_bounds = array<i64: 32, 128>}, {pipeline_mode = #tpu.pipeline_mode<synchronous>, transform_indices = @transform_2, window_bounds = array<i64: 1, 128>}, {pipeline_mode = #tpu.pipeline_mode<synchronous>, transform_indices = @transform_3, window_bounds = array<i64: 128, 128>}, {pipeline_mode = #tpu.pipeline_mode<synchronous>, transform_indices = @transform_4, window_bounds = array<i64: 1, 128>}, {transform_indices = @transform_5, window_bounds = array<i64: 8, 128>}]} {
    %c0_i32 = arith.constant 0 : i32
    %0 = arith.cmpi eq, %arg1, %c0_i32 : i32
    %1 = arith.extui %0 : i1 to i32
    %c0_i32_0 = arith.constant 0 : i32
    %2 = arith.cmpi ne, %1, %c0_i32_0 : i32
    scf.if %2 {
      %cst_16 = arith.constant 0.000000e+00 : f32
      %19 = vector.broadcast %cst_16 : f32 to vector<8x128xf32>
      %c0_17 = arith.constant 0 : index
      %c0_18 = arith.constant 0 : index
      %20 = vector.load %arg8[%c0_17, %c0_18] : memref<8x128xf32, #tpu.memory_space<vmem>>, vector<8x128xf32>
      tpu.vector_store %arg8[%c0_17, %c0_18], %19 {strides = array<i32>} : memref<8x128xf32, #tpu.memory_space<vmem>>, vector<8x128xf32>,
    } else {
    }
    %c0 = arith.constant 0 : index
    %c0_1 = arith.constant 0 : index
    %3 = vector.load %arg2[%c0, %c0_1] : memref<8x32xf32, #tpu.memory_space<vmem>>, vector<8x32xf32>
    %c0_2 = arith.constant 0 : index
    %c0_3 = arith.constant 0 : index
    %4 = vector.load %arg3[%c0_2, %c0_3] : memref<32x128xf32, #tpu.memory_space<vmem>>, vector<32x128xf32>
    %cst = arith.constant dense<0.000000e+00> : vector<8x128xf32>
    %5 = tpu.matmul %3, %4, %cst {dimension_numbers = #tpu.dot_dimension_numbers<[1], [0], [0], [1], [0, 0, 1, 1], [], []>} : vector<8x32xf32>, vector<32x128xf32>, vector<8x128xf32> -> vector<8x128xf32>
    %c0_4 = arith.constant 0 : index
    %c0_5 = arith.constant 0 : index
    %6 = vector.load %arg4[%c0_4, %c0_5] : memref<1x128xf32, #tpu.memory_space<vmem>>, vector<1x128xf32>
    %7 = vector.broadcast %6 : vector<1x128xf32> to vector<8x128xf32>
    %8 = arith.addf %5, %7 : vector<8x128xf32>
    %cst_6 = arith.constant 0.000000e+00 : f32
    %9 = vector.broadcast %cst_6 : f32 to vector<8x128xf32>
    %10 = arith.maximumf %8, %9 : vector<8x128xf32>
    %c0_7 = arith.constant 0 : index
    %c0_8 = arith.constant 0 : index
    %11 = vector.load %arg8[%c0_7, %c0_8] : memref<8x128xf32, #tpu.memory_space<vmem>>, vector<8x128xf32>
    %c0_9 = arith.constant 0 : index
    %c0_10 = arith.constant 0 : index
    %12 = vector.load %arg5[%c0_9, %c0_10] : memref<128x128xf32, #tpu.memory_space<vmem>>, vector<128x128xf32>
    %cst_11 = arith.constant dense<0.000000e+00> : vector<8x128xf32>
    %13 = tpu.matmul %10, %12, %cst_11 {dimension_numbers = #tpu.dot_dimension_numbers<[1], [0], [0], [1], [0, 0, 1, 1], [], []>} : vector<8x128xf32>, vector<128x128xf32>, vector<8x128xf32> -> vector<8x128xf32>
    %14 = arith.addf %11, %13 : vector<8x128xf32>
    %c0_12 = arith.constant 0 : index
    %c0_13 = arith.constant 0 : index
    %15 = vector.load %arg8[%c0_12, %c0_13] : memref<8x128xf32, #tpu.memory_space<vmem>>, vector<8x128xf32>
    tpu.vector_store %arg8[%c0_12, %c0_13], %14 {strides = array<i32>} : memref<8x128xf32, #tpu.memory_space<vmem>>, vector<8x128xf32>,
    %c0_i32_14 = arith.constant 0 : i32
    %16 = arith.cmpi eq, %arg1, %c0_i32_14 : i32
    %17 = arith.extui %16 : i1 to i32
    %c0_i32_15 = arith.constant 0 : i32
    %18 = arith.cmpi ne, %17, %c0_i32_15 : i32
    scf.if %18 {
      %c0_16 = arith.constant 0 : index
      %c0_17 = arith.constant 0 : index
      %19 = vector.load %arg8[%c0_16, %c0_17] : memref<8x128xf32, #tpu.memory_space<vmem>>, vector<8x128xf32>
      %c0_18 = arith.constant 0 : index
      %c0_19 = arith.constant 0 : index
      %20 = vector.load %arg6[%c0_18, %c0_19] : memref<1x128xf32, #tpu.memory_space<vmem>>, vector<1x128xf32>
      %21 = vector.broadcast %20 : vector<1x128xf32> to vector<8x128xf32>
      %22 = arith.addf %19, %21 : vector<8x128xf32>
      %c0_20 = arith.constant 0 : index
      %c0_21 = arith.constant 0 : index
      %23 = vector.load %arg7[%c0_20, %c0_21] : memref<8x128xf32, #tpu.memory_space<vmem>>, vector<8x128xf32>
      tpu.vector_store %arg7[%c0_20, %c0_21], %22 {strides = array<i32>} : memref<8x128xf32, #tpu.memory_space<vmem>>, vector<8x128xf32>,
    } else {
    }
    return
  }
  func.func @transform_0(%arg0: i32, %arg1: i32) -> (i32, i32) {
    %c0_i32 = arith.constant 0 : i32
    %c0_i32_0 = arith.constant 0 : i32
    return %arg0, %c0_i32 : i32, i32
  }
  func.func @transform_1(%arg0: i32, %arg1: i32) -> (i32, i32) {
    %c0_i32 = arith.constant 0 : i32
    %c0_i32_0 = arith.constant 0 : i32
    return %c0_i32, %arg1 : i32, i32
  }
  func.func @transform_2(%arg0: i32, %arg1: i32) -> (i32, i32) {
    %c0_i32 = arith.constant 0 : i32
    %c0_i32_0 = arith.constant 0 : i32
    return %c0_i32, %arg1 : i32, i32
  }
  func.func @transform_3(%arg0: i32, %arg1: i32) -> (i32, i32) {
    %c0_i32 = arith.constant 0 : i32
    %c0_i32_0 = arith.constant 0 : i32
    return %arg1, %c0_i32 : i32, i32
  }
  func.func @transform_4(%arg0: i32, %arg1: i32) -> (i32, i32) {
    %c0_i32 = arith.constant 0 : i32
    %c0_i32_0 = arith.constant 0 : i32
    %c0_i32_1 = arith.constant 0 : i32
    return %c0_i32, %c0_i32_0 : i32, i32
  }
  func.func @transform_5(%arg0: i32, %arg1: i32) -> (i32, i32) {
    %c0_i32 = arith.constant 0 : i32
    %c0_i32_0 = arith.constant 0 : i32
    return %arg0, %c0_i32 : i32, i32
  }
}

</mosaic_0001>

<bundles_post_ra>
// kernel: node_classification_forward.1
= control target key start
LH: loop header
LB: loop body
LE: loop exit
PB: predicated region body
PF: predicated region fallthrough
CT: control target
= control target key end

     0   :  { %10 = vsyncpa [#allocation4], 0  ;;  %s573_s0 = inlined_call_operand.hbm [shape: f32[8,32], index: 0, kind: input, shape index: {}]   ;;  %s574_s1 = inlined_call_operand.hbm [shape: f32[32,128], index: 1, kind: input, shape index: {}]   ;;  %s575_s2 = inlined_call_operand.vmem [shape: f32[1,128], index: 2, kind: input, shape index: {}]   ;;  %s576_s3 = inlined_call_operand.hbm [shape: f32[128,128], index: 3, kind: input, shape index: {}]   ;;  %s577_s4 = inlined_call_operand.vmem [shape: f32[1,128], index: 4, kind: input, shape index: {}]   ;;  %s578_s5 = inlined_call_operand.hbm [shape: f32[8,128], index: 5, kind: output, shape index: {}]  }
   0x1   :  { %11 = vsyncpa [#allocation7], 0 }
   0x2   :  { %12 = vsyncpa [#allocation5], 0  ;;  %s474_s18 = smov [#allocation6]   ;;  %s380_s22 = scalar_lea.hbm %s574_s1, 512 }
   0x3   :  { %s28_s19 = sshll.u32 %s474_s18, 4  ;;  %p381_p0 = scmp.ne.s32.totalorder %s574_s1, %s380_s22  ;;  %s29_s19 = int_to_ptr.vmem [resolvable:$true] %s28_s19 }
   0x4   :  { %p384_p1 = scmp.lt.u32.totalorder %s380_s22, %s574_s1 }
   0x6   :  { %p386_p2 = pnand %p384_p1, %p381_p0 }
   0x8   :  { %389 = shalt.err (!%p386_p2)
}
   0x9   :  { %s390_s27 = scalar_lea.vmem %s29_s19, 512  ;;  %p395_p4 = scmp.lt.s32.totalorder %s29_s19, %s29_s19 }
   0xa   :  { %p391_p3 = scmp.ne.s32.totalorder %s29_s19, %s390_s27  ;;  %p396_p5 = scmp.lt.s32.totalorder %s390_s27, %s390_s27 }
   0xc   :  { %p397_p6 = por %p396_p5, %p395_p4 }
   0xe   :  { %p398_p7 = pnand %p397_p6, %p391_p3 }
  0x10   :  { %401 = shalt.err (!%p398_p7)
}
  0x11   :  { %s475_s28 = smov 128   ;;  %s476_s29 = smov 8  }
  0x12   :  { %34 = dma.hbm_to_vmem [thread:$0]  %s574_s1, 512, %s29_s19, [#allocation7], %s475_s28, %s475_s28, %s476_s29  }
  0x13   :  { %s477_s7 = smov [#allocation3]   ;;  %s478_s9 = smov [#allocation8]  }
  0x14   :  { %s19_s8 = sshll.u32 %s477_s7, 4  ;;  %s42_s10 = sshll.u32 %s478_s9, 4  ;;  %s20_s8 = int_to_ptr.vmem [resolvable:$true] %s19_s8  ;;  %s43_s10 = int_to_ptr.vmem [resolvable:$true] %s42_s10 }
  0x15   :  { %s402_s13 = scalar_lea.hbm %s573_s0, 128 }
  0x16   :  { %p403_p8 = scmp.ne.s32.totalorder %s573_s0, %s402_s13  ;;  %p406_p9 = scmp.lt.u32.totalorder %s402_s13, %s573_s0 }
  0x18   :  { %p408_p10 = pnand %p406_p9, %p403_p8 }
  0x1a   :  { %411 = shalt.err (!%p408_p10)
}
  0x1b   :  { %s412_s1 = scalar_lea.vmem %s20_s8, 128  ;;  %p417_p12 = scmp.lt.s32.totalorder %s20_s8, %s20_s8 }
  0x1c   :  { %p413_p11 = scmp.ne.s32.totalorder %s20_s8, %s412_s1  ;;  %p418_p13 = scmp.lt.s32.totalorder %s412_s1, %s412_s1 }
  0x1e   :  { %p419_p0 = por %p418_p13, %p417_p12 }
  0x20   :  { %p420_p1 = pnand %p419_p0, %p413_p11 }
  0x22   :  { %423 = shalt.err (!%p420_p1)
}
  0x23   :  { %22 = dma.hbm_to_vmem [thread:$0]  %s573_s0, 128, %s20_s8, [#allocation4]  }
  0x24   :  { %s424_s22 = scalar_lea.hbm %s576_s3, 2048 }
  0x25   :  { %p425_p2 = scmp.ne.s32.totalorder %s576_s3, %s424_s22  ;;  %p428_p3 = scmp.lt.u32.totalorder %s424_s22, %s576_s3 }
  0x27   :  { %p430_p4 = pnand %p428_p3, %p425_p2 }
  0x29   :  { %433 = shalt.err (!%p430_p4)
}
  0x2a   :  { %s434_s27 = scalar_lea.vmem %s43_s10, 2048  ;;  %p439_p6 = scmp.lt.s32.totalorder %s43_s10, %s43_s10 }
  0x2b   :  { %p435_p5 = scmp.ne.s32.totalorder %s43_s10, %s434_s27  ;;  %p440_p7 = scmp.lt.s32.totalorder %s434_s27, %s434_s27 }
  0x2d   :  { %p441_p8 = por %p440_p7, %p439_p6 }
  0x2f   :  { %p442_p9 = pnand %p441_p8, %p435_p5 }
  0x31   :  { %445 = shalt.err (!%p442_p9)
}
  0x32   :  { %48 = dma.hbm_to_vmem [thread:$0]  %s576_s3, 2048, %s43_s10, [#allocation7], %s475_s28, %s475_s28, %s476_s29  }
  0x33   :  { %468 = dma.done.wait [#allocation4], 128  }
  0x34   :  { %469 = vsyncadd [#allocation4], 4294967168 }
  0x35   :  { %470 = dma.done.wait [#allocation7], 2560  }
  0x36   :  { %471 = vsyncadd [#allocation7], 4294964736  ;;  %v479_v0 = vmov 0.0|0.0   ;;  %vm480_vm0 = vmmov 0   ;;  %v481_v1 = vmov 0.0   ;;  %v66_v2 = vld [vmem:[#allocation6] sm:$0xff] }
  0x37   :  { %341 = vmatprep.subr.bf16.mxu0 %v479_v0  ;;  %303 = vmatprep.mubr.msk.f32.mxu0 %vm480_vm0, %v481_v1  ;;  %v67_v3 = vld [vmem:[#allocation6 + $0x8] sm:$0xff]  ;;  %v68_v4 = vld [vmem:[#allocation6 + $0x10] sm:$0xff]  ;;  %v69_v6 = vld [vmem:[#allocation6 + $0x18] sm:$0xff]  ;;  %vm77_vm1 = vcmask 261120   ;;  %s482_s7 = smov [#allocation9]  }
  0x38   :  { %347 = vmatprep.subr.bf16.mxu1 %v479_v0  ;;  %338 = vmatprep.mubr.msk.f32.mxu1 %vm480_vm0, %v481_v1  ;;  %v342_v5 = vpack.c.bf16 %v67_v3, %v66_v2  ;;  %v153_v7 = vld [vmem:[#allocation8] sm:$0xff]  ;;  %v154_v8 = vld [vmem:[#allocation8 + $0x8] sm:$0xff]  ;;  %v155_v9 = vld [vmem:[#allocation8 + $0x10] sm:$0xff]  ;;  %v345_v11 = vpack.c.bf16 %v69_v6, %v68_v4  ;;  %s260_s8 = sshll.u32 %s482_s7, 4  ;;  %s261_s8 = int_to_ptr.vmem [resolvable:$true] %s260_s8 }
  0x39   :  { %v156_v10 = vld [vmem:[#allocation8 + $0x18] sm:$0xff]  ;;  %v348_v12 = vpack.c.bf16 %v154_v8, %v153_v7  ;;  %v157_v14 = vld [vmem:[#allocation8 + $0x20] sm:$0xff]  ;;  %v158_v15 = vld [vmem:[#allocation8 + $0x28] sm:$0xff]  ;;  %s446_s9 = scalar_lea.vmem %s261_s8, 128  ;;  %p451_p11 = scmp.lt.s32.totalorder %s261_s8, %s261_s8 }
  0x3a   :  { %343 = vmatpush3.bf16.msra.mxu0 %v342_v5  ;;  %v351_v13 = vpack.c.bf16 %v156_v10, %v155_v9  ;;  %v65_v16 = vld [vmem:[#allocation3] sm:$0xff]  ;;  %v354_v17 = vpack.c.bf16 %v158_v15, %v157_v14  ;;  %v159_v18 = vld [vmem:[#allocation8 + $0x30] sm:$0xff]  ;;  %v161_v21 = vld [vmem:[#allocation8 + $0x40] sm:$0xff]  ;;  %p447_p10 = scmp.ne.s32.totalorder %s261_s8, %s446_s9  ;;  %p452_p12 = scmp.lt.s32.totalorder %s446_s9, %s446_s9 }
  0x3b   :  { %344 = vmatprep.subr.bf16.mxu0 %v479_v0  ;;  %349 = vmatpush3.bf16.msra.mxu1 %v348_v12  ;;  %v160_v19 = vld [vmem:[#allocation8 + $0x38] sm:$0xff]  ;;  %v162_v22 = vld [vmem:[#allocation8 + $0x48] sm:$0xff]  ;;  %v163_v24 = vld [vmem:[#allocation8 + $0x50] sm:$0xff] }
  0x3c   :  { %350 = vmatprep.subr.bf16.mxu1 %v479_v0  ;;  %v357_v20 = vpack.c.bf16 %v160_v19, %v159_v18  ;;  %v360_v23 = vpack.c.bf16 %v162_v22, %v161_v21  ;;  %v164_v25 = vld [vmem:[#allocation8 + $0x58] sm:$0xff]  ;;  %v165_v27 = vld [vmem:[#allocation8 + $0x60] sm:$0xff]  ;;  %v166_v28 = vld [vmem:[#allocation8 + $0x68] sm:$0xff]  ;;  %p453_p13 = por %p452_p12, %p451_p11 }
  0x3d   :  { %v363_v26 = vpack.c.bf16 %v164_v25, %v163_v24  ;;  %v366_v29 = vpack.c.bf16 %v166_v28, %v165_v27  ;;  %v167_v30 = vld [vmem:[#allocation8 + $0x70] sm:$0xff]  ;;  %v168_v31 = vld [vmem:[#allocation8 + $0x78] sm:$0xff] }
  0x3e   :  { %346 = vmatpush3.bf16.msra.mxu0 %v345_v11  ;;  %v369_v32 = vpack.c.bf16 %v168_v31, %v167_v30  ;;  %v270_v33 = vld [vmem:[%s575_s2] ss:$0 sm:$0xff]  ;;  %p454_p0 = pnand %p453_p13, %p447_p10 }
  0x3f   :  { %352 = vmatpush3.bf16.msra.mxu1 %v351_v13  ;;  %v272_v38 = vld [vmem:[%s577_s4] ss:$0 sm:$0xff] }
  0x40   :  { %353 = vmatprep.subr.bf16.mxu1 %v479_v0 }
  0x41   :  { %304 = vmatmul.mubr.msk.f32.vlgmr.msra.gmra.mrb[0].mxu0 %vm77_vm1, %v65_v16 }
  0x43   :  { %355 = vmatpush3.bf16.msra.mxu1 %v354_v17 }
  0x44   :  { %356 = vmatprep.subr.bf16.mxu1 %v479_v0 }
  0x47   :  { %358 = vmatpush3.bf16.msra.mxu1 %v357_v20 }
  0x48   :  { %359 = vmatprep.subr.bf16.mxu1 %v479_v0 }
  0x4b   :  { %361 = vmatpush3.bf16.msra.mxu1 %v360_v23 }
  0x4c   :  { %362 = vmatprep.subr.bf16.mxu1 %v479_v0 }
  0x4f   :  { %364 = vmatpush3.bf16.msra.mxu1 %v363_v26 }
  0x50   :  { %365 = vmatprep.subr.bf16.mxu1 %v479_v0 }
  0x53   :  { %367 = vmatpush3.bf16.msra.mxu1 %v366_v29 }
  0x54   :  { %368 = vmatprep.subr.bf16.mxu1 %v479_v0 }
  0x57   :  { %370 = vmatpush3.bf16.msra.mxu1 %v369_v32 }
 0x114   :  { %v147_v34 = vpop.f32.mrb[0].mxu0 }
 0x115   :  { %v148_v35 = vadd.f32 %v270_v33, %v147_v34  ;;  %v305_v36 = vpop.f32.mrb[1].mxu0 }
 0x117   :  { %v151_v37 = vmax.f32 %v148_v35, 0.0 }
 0x119   :  { %339 = vmatmul.mubr.f32.vlgmr.msra.gmra.mrb[0].mxu1 %v151_v37 }
 0x1ec   :  { %v235_v39 = vpop.f32.mrb[0].mxu1 }
 0x1ed   :  { %v252_v40 = vadd.f32 %v272_v38, %v235_v39  ;;  %v340_v41 = vpop.f32.mrb[1].mxu1 }
 0x1ef   :  { %253 = vst [vmem:[#allocation9] sm:$0xff] %v252_v40 }
 0x1f0   :  { %457 = shalt.err (!%p454_p0)
}
 0x1f1   :  { %s458_s11 = scalar_lea.hbm %s578_s5, 128 }
 0x1f2   :  { %p459_p1 = scmp.ne.s32.totalorder %s578_s5, %s458_s11  ;;  %p462_p2 = scmp.lt.u32.totalorder %s458_s11, %s578_s5 }
 0x1f4   :  { %p464_p3 = pnand %p462_p2, %p459_p1 }
 0x1f6   :  { %467 = shalt.err (!%p464_p3)
}
 0x1f7   :  { %263 = dma.vmem_to_hbm [thread:$0]  %s261_s8, 128, %s578_s5, [#allocation5]  }
 0x1f8   :  { %472 = dma.done.wait [#allocation5], 128  }
 0x1f9   :  { %473 = vsyncadd [#allocation5], 4294967168 }
 0x1fa   :  { %267 = vsyncpa [#allocation4], 1 }
 0x1fb   :  { %268 = vsyncpa [#allocation7], 1 }
 0x1fc   :  { %269 = vsyncpa [#allocation5], 1 }

</bundles_post_ra>
